<compile_context>
chip_gen: v7x
topology: tpu7x:2x2x1
jax: 0.10.0
libtpu: 0.0.40
codegen_flags: <defaults>
</compile_context>

<pallas_src>
import functools
import math

import jax
import jax.numpy as jnp
from jax.experimental import pallas as pl
from jax.experimental.pallas import tpu as pltpu


_SUBLANE_F32 = 8  # f32 sublane tile; bf16 packs 2x -> 16


def _round_up(x, m):
    return ((x + m - 1) // m) * m


def _apply_act(y, activation):
    if activation == "lrelu":        # nn.LeakyReLU() default negative_slope = 0.01
        return jnp.where(y > 0, y, 0.01 * y)
    if activation == "relu":
        return jnp.maximum(y, 0.0)
    if activation == "tanh":
        return jnp.tanh(y)           # EUP slot, co-issues for free
    raise ValueError(f"unknown activation {activation!r}")


# ----------------------------------------------------------------------------
# Fused kernel: whole MLP in one body, intermediates never leave vregs.
# Ref order: x, [cond], w_packed, b_packed, out
#   segs[i]     = tuple of (row_offset, n_rows) segments of w_packed for layer i
#                 (layer 0 has two segments when condition=True: x part, cond part)
#   out_dims[i] = true (unpadded) output width of layer i
# ----------------------------------------------------------------------------
def _fused_mlp_kernel(*refs, segs, out_dims, condition, activation, compute_dtype):
    out_ref = refs[-1]
    x_ref = refs[0]
    idx = 1
    if condition:
        cond_ref = refs[idx]
        idx += 1
    w_ref = refs[idx]
    b_ref = refs[idx + 1]

    n_layers = len(out_dims)

    def wslab(row, n_in, n_out):
        # Static slice of the packed weight buffer (row is sublane-tile aligned).
        return w_ref[row:row + n_in, 0:n_out]

    # ---- layer 0 ----
    out0 = out_dims[0]
    if condition:
        (rx, nx), (rc, nc) = segs[0]
        # [x | cond] @ W0 == x @ W0_x + cond @ W0_cond  (accumulated in f32)
        h = jnp.dot(x_ref[...].astype(compute_dtype), wslab(rx, nx, out0),
                    preferred_element_type=jnp.float32)
        h = h + jnp.dot(cond_ref[...].astype(compute_dtype), wslab(rc, nc, out0),
                        preferred_element_type=jnp.float32)
    else:
        ((r0, n0),) = segs[0]
        h = jnp.dot(x_ref[...].astype(compute_dtype), wslab(r0, n0, out0),
                    preferred_element_type=jnp.float32)
    h = h + b_ref[0:1, 0:out0]
    if n_layers > 1:
        h = _apply_act(h, activation)

    # ---- layers 1 .. n-1 ----
    for li in range(1, n_layers):
        ((r, n_in),) = segs[li]
        outl = out_dims[li]
        h = jnp.dot(h.astype(compute_dtype), wslab(r, n_in, outl),
                    preferred_element_type=jnp.float32)
        h = h + b_ref[li:li + 1, 0:outl]
        if li != n_layers - 1:
            h = _apply_act(h, activation)

    out_ref[...] = h.astype(out_ref.dtype)


# ----------------------------------------------------------------------------
# VAEDecoder forward (mirrors the PyTorch module)
# ----------------------------------------------------------------------------
class VAEDecoderPallas:
    def __init__(self, dims, condition, condition_size, activation, key,
                 weight_dtype=jnp.float32):
        self.dims = list(dims)
        self.condition = bool(condition)
        self.condition_size = int(condition_size) if condition else 0
        self.activation = activation
        self.weight_dtype = jnp.dtype(weight_dtype)

        d = list(dims)
        if self.condition:
            d[0] = d[0] + self.condition_size

        # ---- canonical (unpadded, f32) params, ~nn.Linear uniform init ----
        self.params = []
        for in_f, out_f in zip(d[:-1], d[1:]):
            key, kw, kb = jax.random.split(key, 3)
            bound = 1.0 / math.sqrt(in_f)
            w = jax.random.uniform(kw, (in_f, out_f), jnp.float32, -bound, bound)
            b = jax.random.uniform(kb, (out_f,), jnp.float32, -bound, bound)
            self.params.append((w, b))
        self.n_layers = len(self.params)
        self.out_dims = tuple(d[1:])
        max_out = max(self.out_dims)

        # Row-offset alignment so in-kernel slices stay sublane-tile aligned
        # for the stored weight dtype (8 rows f32, 16 rows bf16).
        row_align = _SUBLANE_F32 * (4 // self.weight_dtype.itemsize)

        # ---- pack every weight into one buffer; segments per layer ----
        segs = []
        row = 0
        for i, (w, _) in enumerate(self.params):
            in_f, _ = w.shape
            if i == 0 and self.condition:
                rx = row
                rc = rx + _round_up(self.dims[0], row_align)
                segs.append(((rx, self.dims[0]), (rc, self.condition_size)))
                row = rc + _round_up(self.condition_size, row_align)
            else:
                segs.append(((row, in_f),))
                row += _round_up(in_f, row_align)
        self.segs = tuple(segs)
        total_rows = _round_up(row, row_align)

        w_packed = jnp.zeros((total_rows, max_out), jnp.float32)
        b_packed = jnp.zeros((self.n_layers, max_out), jnp.float32)
        for i, (w, b) in enumerate(self.params):
            out_f = self.out_dims[i]
            if i == 0 and self.condition:
                (rx, nx), (rc, nc) = segs[0]
                w_packed = w_packed.at[rx:rx + nx, :out_f].set(w[:nx, :])
                w_packed = w_packed.at[rc:rc + nc, :out_f].set(w[nx:, :])
            else:
                ((r, n_in),) = segs[i]
                w_packed = w_packed.at[r:r + n_in, :out_f].set(w)
            b_packed = b_packed.at[i, :out_f].set(b)

        self.w_packed = w_packed.astype(self.weight_dtype)
        self.b_packed = b_packed            # bias stays f32 (added post-accumulation)

    def __call__(self, x, condition_h):
        B, f0 = x.shape
        assert f0 == self.dims[0]

        inputs = [x]
        if self.condition:
            # Expected condition_h layout: [B, 1, C] (or already [B, C]).
            # This reshape is a free metadata op (no pad/slice data movement).
            inputs.append(condition_h.reshape(B, self.condition_size))
        inputs += [self.w_packed, self.b_packed]

        out_last = self.out_dims[-1]

        # Advisory cost estimate from actual (unpadded) layer shapes.
        flops = 0
        transcend = 0
        for i, (w, _) in enumerate(self.params):
            in_f, out_f = w.shape
            flops += 2 * B * in_f * out_f
            if i != self.n_layers - 1 and self.activation == "tanh":
                transcend += B * out_f
        bytes_accessed = sum(int(a.size) * a.dtype.itemsize for a in inputs)
        bytes_accessed += B * out_last * 4

        kernel = functools.partial(
            _fused_mlp_kernel,
            segs=self.segs,
            out_dims=self.out_dims,
            condition=self.condition,
            activation=self.activation,
            compute_dtype=self.weight_dtype,
        )

        return pl.pallas_call(
            kernel,
            out_shape=jax.ShapeDtypeStruct((B, out_last), jnp.float32),
            in_specs=[pl.BlockSpec(memory_space=pltpu.VMEM)] * len(inputs),
            out_specs=pl.BlockSpec(memory_space=pltpu.VMEM),
            cost_estimate=pl.CostEstimate(
                flops=flops,
                transcendentals=transcend,
                bytes_accessed=bytes_accessed,
            ),
        )(*inputs)


# ----------------------------------------------------------------------------
# Reference in plain JAX (faithful to the PyTorch forward)
# ----------------------------------------------------------------------------
def _ref_forward(model, x, condition_h):
    if model.condition:
        cond = jnp.squeeze(condition_h)            # torch .squeeze() semantics
        x = jnp.concatenate((x, cond), axis=1)
    for i, (w, b) in enumerate(model.params):
        x = x @ w + b
        if i != model.n_layers - 1:
            x = _apply_act(x, model.activation)
    return x


if __name__ == "__main__":
    key = jax.random.PRNGKey(0)
    k_model, k_x, k_c = jax.random.split(key, 3)

    # Small shapes implied by the module: MLP decoder over 2-D [B, F] inputs.
    dims = [8, 32, 32, 16]          # latent -> hidden -> hidden -> output
    condition_size = 8
    batch = 4

    x = jax.random.normal(k_x, (batch, dims[0]), jnp.float32)
    condition_h = jax.random.normal(k_c, (batch, 1, condition_size), jnp.float32)

    # f32-weight path (bit-for-bit comparable with the reference).
    model = VAEDecoderPallas(
        dims=dims, condition=True, condition_size=condition_size,
        activation="lrelu", key=k_model,
    )
    out = jax.block_until_ready(model(x, condition_h))
    ref = _ref_forward(model, x, condition_h)
    assert out.shape == (batch, dims[-1])
    assert jnp.allclose(out, ref, atol=1e-5, rtol=1e-5)

    # bf16-weight path (halves weight DMA bytes; f32 accumulation, loose tol).
    model_bf16 = VAEDecoderPallas(
        dims=dims, condition=True, condition_size=condition_size,
        activation="lrelu", key=k_model, weight_dtype=jnp.bfloat16,
    )
    out_bf16 = jax.block_until_ready(model_bf16(x, condition_h))
    ref_bf16 = _ref_forward(model_bf16, x, condition_h)
    assert out_bf16.shape == (batch, dims[-1])
    assert jnp.allclose(out_bf16, ref_bf16, atol=1e-1, rtol=1e-1)

    print("KERNEL_OK")
</pallas_src>

<mosaic_0001>
module attributes {stable_mosaic.version = 11 : i64} {
  func.func @_fused_mlp_kernel(%arg0: memref<4x8xf32, #tpu.memory_space<vmem>>, %arg1: memref<4x8xf32, #tpu.memory_space<vmem>>, %arg2: memref<80x32xf32, #tpu.memory_space<vmem>>, %arg3: memref<3x32xf32, #tpu.memory_space<vmem>>, %arg4: memref<4x16xf32, #tpu.memory_space<vmem>>) attributes {dimension_semantics = [], scalar_prefetch = 0 : i64, scratch_operands = 0 : i64, tpu.core_type = #tpu.core_type<tc>} {
    %c0 = arith.constant 0 : index
    %c0_0 = arith.constant 0 : index
    %0 = vector.load %arg0[%c0, %c0_0] : memref<4x8xf32, #tpu.memory_space<vmem>>, vector<4x8xf32>
    %c0_1 = arith.constant 0 : index
    %c0_2 = arith.constant 0 : index
    %1 = vector.load %arg2[%c0_1, %c0_2] : memref<80x32xf32, #tpu.memory_space<vmem>>, vector<8x32xf32>
    %cst = arith.constant dense<0.000000e+00> : vector<4x32xf32>
    %2 = tpu.matmul %0, %1, %cst {dimension_numbers = #tpu.dot_dimension_numbers<[1], [0], [0], [1], [0, 0, 1, 1], [], []>} : vector<4x8xf32>, vector<8x32xf32>, vector<4x32xf32> -> vector<4x32xf32>
    %c0_3 = arith.constant 0 : index
    %c0_4 = arith.constant 0 : index
    %3 = vector.load %arg1[%c0_3, %c0_4] : memref<4x8xf32, #tpu.memory_space<vmem>>, vector<4x8xf32>
    %c8 = arith.constant 8 : index
    %c0_5 = arith.constant 0 : index
    %4 = vector.load %arg2[%c8, %c0_5] : memref<80x32xf32, #tpu.memory_space<vmem>>, vector<8x32xf32>
    %cst_6 = arith.constant dense<0.000000e+00> : vector<4x32xf32>
    %5 = tpu.matmul %3, %4, %cst_6 {dimension_numbers = #tpu.dot_dimension_numbers<[1], [0], [0], [1], [0, 0, 1, 1], [], []>} : vector<4x8xf32>, vector<8x32xf32>, vector<4x32xf32> -> vector<4x32xf32>
    %6 = arith.addf %2, %5 : vector<4x32xf32>
    %c0_7 = arith.constant 0 : index
    %c0_8 = arith.constant 0 : index
    %7 = vector.load %arg3[%c0_7, %c0_8] : memref<3x32xf32, #tpu.memory_space<vmem>>, vector<1x32xf32>
    %8 = vector.broadcast %7 : vector<1x32xf32> to vector<4x32xf32>
    %9 = arith.addf %6, %8 : vector<4x32xf32>
    %cst_9 = arith.constant 0.000000e+00 : f32
    %10 = vector.broadcast %cst_9 : f32 to vector<4x32xf32>
    %11 = arith.cmpf ogt, %9, %10 : vector<4x32xf32>
    %cst_10 = arith.constant 0.00999999977 : f32
    %12 = vector.broadcast %cst_10 : f32 to vector<4x32xf32>
    %13 = arith.mulf %12, %9 : vector<4x32xf32>
    %14 = arith.select %11, %9, %13 : vector<4x32xi1>, vector<4x32xf32>
    %c16 = arith.constant 16 : index
    %c0_11 = arith.constant 0 : index
    %15 = vector.load %arg2[%c16, %c0_11] : memref<80x32xf32, #tpu.memory_space<vmem>>, vector<32x32xf32>
    %cst_12 = arith.constant dense<0.000000e+00> : vector<4x32xf32>
    %16 = tpu.matmul %14, %15, %cst_12 {dimension_numbers = #tpu.dot_dimension_numbers<[1], [0], [0], [1], [0, 0, 1, 1], [], []>} : vector<4x32xf32>, vector<32x32xf32>, vector<4x32xf32> -> vector<4x32xf32>
    %c1 = arith.constant 1 : index
    %c0_13 = arith.constant 0 : index
    %17 = vector.load %arg3[%c1, %c0_13] : memref<3x32xf32, #tpu.memory_space<vmem>>, vector<1x32xf32>
    %18 = vector.broadcast %17 : vector<1x32xf32> to vector<4x32xf32>
    %19 = arith.addf %16, %18 : vector<4x32xf32>
    %cst_14 = arith.constant 0.000000e+00 : f32
    %20 = vector.broadcast %cst_14 : f32 to vector<4x32xf32>
    %21 = arith.cmpf ogt, %19, %20 : vector<4x32xf32>
    %cst_15 = arith.constant 0.00999999977 : f32
    %22 = vector.broadcast %cst_15 : f32 to vector<4x32xf32>
    %23 = arith.mulf %22, %19 : vector<4x32xf32>
    %24 = arith.select %21, %19, %23 : vector<4x32xi1>, vector<4x32xf32>
    %c48 = arith.constant 48 : index
    %c0_16 = arith.constant 0 : index
    %25 = vector.load %arg2[%c48, %c0_16] : memref<80x32xf32, #tpu.memory_space<vmem>>, vector<32x16xf32>
    %cst_17 = arith.constant dense<0.000000e+00> : vector<4x16xf32>
    %26 = tpu.matmul %24, %25, %cst_17 {dimension_numbers = #tpu.dot_dimension_numbers<[1], [0], [0], [1], [0, 0, 1, 1], [], []>} : vector<4x32xf32>, vector<32x16xf32>, vector<4x16xf32> -> vector<4x16xf32>
    %c2 = arith.constant 2 : index
    %c0_18 = arith.constant 0 : index
    %27 = vector.load %arg3[%c2, %c0_18] : memref<3x32xf32, #tpu.memory_space<vmem>>, vector<1x16xf32>
    %28 = vector.broadcast %27 : vector<1x16xf32> to vector<4x16xf32>
    %29 = arith.addf %26, %28 : vector<4x16xf32>
    %c0_19 = arith.constant 0 : index
    %c0_20 = arith.constant 0 : index
    %30 = vector.load %arg4[%c0_19, %c0_20] : memref<4x16xf32, #tpu.memory_space<vmem>>, vector<4x16xf32>
    tpu.vector_store %arg4[%c0_19, %c0_20], %29 {strides = array<i32>} : memref<4x16xf32, #tpu.memory_space<vmem>>, vector<4x16xf32>,
    return
  }
}

</mosaic_0001>

<bundles_post_ra>
// kernel: tpu_custom_call.1
= control target key start
LH: loop header
LB: loop body
LE: loop exit
PB: predicated region body
PF: predicated region fallthrough
CT: control target
= control target key end

     0   :  { %v455_v3 = vmov 0.0   ;;  %vm22_vm0 = vcmask 64512   ;;  %s541_s0 = inlined_call_operand.vmem [shape: f32[4,8], index: 0, kind: input, shape index: {}]   ;;  %s542_s1 = inlined_call_operand.vmem [shape: f32[4,8], index: 1, kind: input, shape index: {}]   ;;  %s543_s2 = inlined_call_operand.vmem [shape: f32[80,32], index: 2, kind: input, shape index: {}]   ;;  %s544_s3 = inlined_call_operand.vmem [shape: f32[3,32], index: 3, kind: input, shape index: {}]   ;;  %s545_s4 = inlined_call_operand.hbm [shape: f32[4,16], index: 4, kind: output, shape index: {}]  }
   0x1   :  { %v21_v0 = vld [vmem:[%s543_s2 + $0x8] sm:$0xff]  ;;  %v19_v1 = vld [vmem:[%s543_s2] sm:$0xff]  ;;  %383 = vmatprep.subr.mxu0 %v455_v3  ;;  %388 = vmatprep.subr.mxu1 %v455_v3 }
   0x2   :  { %v20_v2 = vld [vmem:[%s542_s1] sm:$0xf] }
   0x3   :  { %v18_v4 = vld [vmem:[%s541_s0] sm:$0xf] }
   0x4   :  { %9 = vsyncpa [#allocation3], 0  ;;  %384 = vmatpush3.msra.mxu0 %v21_v0  ;;  %vm456_vm1 = vmmov 0   ;;  %389 = vmatpush3.msra.mxu1 %v19_v1  ;;  %v178_v5 = vld [vmem:[%s543_s2 + $0x10] sm:$0xff]  ;;  %v179_v6 = vld [vmem:[%s543_s2 + $0x18] sm:$0xff]  ;;  %v457_v8 = vmov 0.0|0.0  }
   0x5   :  { %385 = vmatprep.mubr.msk.f32.mxu0 %vm456_vm1, %v455_v3  ;;  %390 = vmatprep.mubr.msk.f32.mxu1 %vm456_vm1, %v455_v3  ;;  %v416_v7 = vpack.c.bf16 %v179_v6, %v178_v5  ;;  %v180_v9 = vld [vmem:[%s543_s2 + $0x20] sm:$0xff]  ;;  %v181_v10 = vld [vmem:[%s543_s2 + $0x28] sm:$0xff]  ;;  %v264_v12 = vld [vmem:[%s543_s2 + $0x30] sm:$0xff]  ;;  %vm187_vm3 = vcmask 261120   ;;  %s458_s17 = smov [#allocation2]   ;;  %vm346_vm5 = vcmask 125952  }
   0x6   :  { %386 = vmatmul.mubr.msk.f32.vlgmr.msra.gmra.mrb[0].mxu0 %vm22_vm0, %v20_v2  ;;  %391 = vmatmul.mubr.msk.f32.vlgmr.msra.gmra.mrb[0].mxu1 %vm22_vm0, %v18_v4  ;;  %v419_v11 = vpack.c.bf16 %v181_v10, %v180_v9  ;;  %v265_v13 = vld [vmem:[%s543_s2 + $0x38] sm:$0xff]  ;;  %v364_v17 = vld [vmem:[%s544_s3] ss:$0 sm:$0xff]  ;;  %v267_v25 = vld [vmem:[%s543_s2 + $0x48] sm:$0xff]  ;;  %s354_s18 = sshll.u32 %s458_s17, 4  ;;  %s355_s18 = int_to_ptr.vmem [resolvable:$true] %s354_s18 }
   0x7   :  { %401 = vmatprep.mubr.msk.f32.mxu0 %vm456_vm1, %v455_v3  ;;  %412 = vmatprep.mubr.msk.f32.mxu1 %vm456_vm1, %v455_v3  ;;  %v422_v14 = vpack.c.bf16 %v265_v13, %v264_v12  ;;  %v266_v24 = vld [vmem:[%s543_s2 + $0x40] sm:$0xff]  ;;  %s431_s2 = scalar_lea.vmem %s355_s18, 64  ;;  %p436_p1 = scmp.lt.s32.totalorder %s355_s18, %s355_s18 }
   0x8   :  { %415 = vmatprep.subr.bf16.mxu0 %v457_v8  ;;  %421 = vmatprep.subr.bf16.mxu1 %v457_v8  ;;  %v425_v26 = vpack.c.bf16 %v267_v25, %v266_v24  ;;  %v365_v27 = vld [vmem:[%s544_s3 + $0x1] ss:$0 sm:$0xff]  ;;  %v367_v33 = vld [vmem:[%s544_s3 + $0x2] ss:$0 sm:$0xff]  ;;  %p432_p0 = scmp.ne.s32.totalorder %s355_s18, %s431_s2  ;;  %p437_p2 = scmp.lt.s32.totalorder %s431_s2, %s431_s2 }
   0x9   :  { %417 = vmatpush3.bf16.msra.mxu0 %v416_v7  ;;  %423 = vmatpush3.bf16.msra.mxu1 %v422_v14 }
   0xa   :  { %418 = vmatprep.subr.bf16.mxu0 %v457_v8  ;;  %424 = vmatprep.subr.bf16.mxu1 %v457_v8  ;;  %p438_p3 = por %p437_p2, %p436_p1 }
   0xc   :  { %p439_p4 = pnand %p438_p3, %p432_p0 }
   0xd   :  { %420 = vmatpush3.bf16.msra.mxu0 %v419_v11  ;;  %426 = vmatpush3.bf16.msra.mxu1 %v425_v26 }
  0xd9   :  { %v92_v15 = vpop.f32.mrb[0].mxu0  ;;  %v165_v16 = vpop.f32.mrb[0].mxu1 }
  0xda   :  { %v166_v18 = vadd.f32 %v165_v16, %v92_v15  ;;  %v387_v19 = vpop.f32.mrb[1].mxu0  ;;  %v392_v20 = vpop.f32.mrb[1].mxu1 }
  0xdc   :  { %v174_v21 = vadd.f32 %v364_v17, %v166_v18 }
  0xde   :  { %vm175_vm2 = vcmp.gt.f32.partialorder %v174_v21, 0.0  ;;  %v176_v22 = vmul.f32 0.01, %v174_v21 }
  0xe0   :  { %v177_v23 = vsel %vm175_vm2, %v174_v21, %v176_v22 }
  0xe1   :  { %402 = vmatmul.mubr.msk.f32.vlgmr.msra.gmra.mrb[2].mxu0 %vm187_vm3, %v177_v23 }
 0x1b4   :  { %v257_v28 = vpop.f32.mrb[2].mxu0 }
 0x1b5   :  { %v258_v29 = vadd.f32 %v365_v27, %v257_v28  ;;  %v403_v30 = vpop.f32.mrb[3].mxu0 }
 0x1b7   :  { %vm261_vm4 = vcmp.gt.f32.partialorder %v258_v29, 0.0  ;;  %v262_v31 = vmul.f32 0.01, %v258_v29 }
 0x1b9   :  { %v263_v32 = vsel %vm261_vm4, %v258_v29, %v262_v31 }
 0x1ba   :  { %413 = vmatmul.mubr.msk.f32.vlgmr.msra.gmra.mrb[2].mxu1 %vm187_vm3, %v263_v32 }
 0x28d   :  { %v342_v34 = vpop.f32.mrb[2].mxu1 }
 0x28e   :  { %v343_v35 = vadd.f32 %v367_v33, %v342_v34  ;;  %v414_v36 = vpop.f32.mrb[3].mxu1 }
 0x290   :  { %347 = vst.msk [vmem:[#allocation2] sm:$0xf] %vm346_vm5, %v343_v35 }
 0x291   :  { %442 = shalt.err (!%p439_p4)
}
 0x292   :  { %s443_s21 = scalar_lea.hbm %s545_s4, 64 }
 0x293   :  { %p444_p5 = scmp.ne.s32.totalorder %s545_s4, %s443_s21  ;;  %p447_p6 = scmp.lt.u32.totalorder %s443_s21, %s545_s4 }
 0x295   :  { %p449_p7 = pnand %p447_p6, %p444_p5 }
 0x297   :  { %452 = shalt.err (!%p449_p7)
}
 0x298   :  { %357 = dma.vmem_to_hbm [thread:$0]  %s355_s18, 64, %s545_s4, [#allocation3]  }
 0x299   :  { %453 = dma.done.wait [#allocation3], 64  }
 0x29a   :  { %454 = vsyncadd [#allocation3], 4294967232 }
 0x29b   :  { %361 = vsyncpa [#allocation3], 1 }

</bundles_post_ra>
